<compile_context>
chip_gen: v7x
topology: tpu7x:2x2x1
jax: 0.10.0
libtpu: 0.0.40
codegen_flags: <defaults>
</compile_context>

<pallas_src>
import functools

import jax
import jax.numpy as jnp
from jax import lax
from jax.experimental import pallas as pl
from jax.experimental.pallas import tpu as pltpu


def _round_up(x, m):
    return (x + m - 1) // m * m


def _choose_tpb(n, max_tpb):
    """Pick tokens-per-block: multiple of 8, ideally dividing n exactly and
    leaving >=2 grid steps (megacore). Falls back to padding for ragged n."""
    max_tpb = max(8, max_tpb)
    if n >= 8 and n % 8 == 0:
        divisors = [t for t in range(8, min(max_tpb, n) + 1, 8) if n % t == 0]
        if divisors:
            multi_step = [t for t in divisors if n // t >= 2]
            tpb = multi_step[-1] if multi_step else divisors[-1]
            return tpb, n
    tpb = min(max_tpb, _round_up(n, 8))
    return tpb, _round_up(n, tpb)


def _embedding_dropout_kernel(seed_ref, ids_ref, table_ref, out_ref, *,
                              dropout_rate, training):
    """One grid step: gather `tpb` rows via bf16 one-hot MXU matmul + dropout.

    seed_ref : SMEM (1,)      int32    -- scalar-prefetched dropout seed
    ids_ref  : VMEM (tpb, 1)  int32    -- token ids (token on sublane axis)
    table_ref: VMEM (V, D)    bfloat16 -- full embedding table (constant block)
    out_ref  : VMEM (tpb, D)  f32/...  -- lane-dense output tile
    """
    tpb, d = out_ref.shape
    vocab = table_ref.shape[0]

    ids = ids_ref[...]                                          # (tpb, 1)
    # One-hot gather on the MXU (bf16 operands, f32 accumulate). Ids >= vocab
    # yield an all-zero row (safe, unlike a raw dynamic VMEM gather).
    vocab_iota = lax.broadcasted_iota(jnp.int32, (1, vocab), 1)  # single row
    one_hot = (vocab_iota == ids).astype(jnp.bfloat16)           # (tpb, V)
    gathered = jnp.dot(one_hot, table_ref[...],
                       preferred_element_type=jnp.float32)       # (tpb, D) f32

    if training and dropout_rate >= 1.0:
        gathered = jnp.zeros_like(gathered)                      # degenerate p=1
    elif training and dropout_rate > 0.0:
        # Counter-based Bernoulli mask: hash(global element index, seed) and
        # keep iff hash >= rate * 2^32. Fused before the single store.
        base = pl.program_id(0) * tpb
        row = (lax.broadcasted_iota(jnp.int32, (tpb, d), 0)
               + base).astype(jnp.uint32)
        col = lax.broadcasted_iota(jnp.int32, (tpb, d), 1).astype(jnp.uint32)
        idx = row * jnp.uint32(d) + col
        seed_u = seed_ref[0].astype(jnp.uint32)
        x = idx ^ (seed_u * jnp.uint32(0x9E3779B9))
        # lowbias32 finalizer (good avalanche, pure VPU int ops).
        x = (x ^ (x >> 16)) * jnp.uint32(0x7FEB352D)
        x = (x ^ (x >> 15)) * jnp.uint32(0x846CA68B)
        x = x ^ (x >> 16)
        threshold = jnp.uint32(min(int(round(dropout_rate * (1 << 32))),
                                   (1 << 32) - 1))
        scale = jnp.float32(1.0 / (1.0 - dropout_rate))
        gathered = jnp.where(x >= threshold, gathered * scale,
                             jnp.float32(0.0))

    out_ref[...] = gathered.astype(out_ref.dtype)


def embeddings_forward(words, table, *, dropout_rate=0.1, training=False,
                       seed=0, tokens_per_block=512):
    """Pallas implementation of Embeddings.forward(words)."""
    B, S = words.shape
    V, D = table.shape
    N = B * S
    out_dtype = table.dtype
    out_itemsize = jnp.dtype(out_dtype).itemsize

    tpb, n_pad = _choose_tpb(N, tokens_per_block)

    ids = words.reshape(N).astype(jnp.int32)
    if n_pad != N:
        ids = jnp.zeros((n_pad,), jnp.int32).at[:N].set(ids)
    ids2d = ids.reshape(n_pad, 1)                 # token on the sublane axis
    seed_arr = jnp.asarray([seed], dtype=jnp.int32)

    # bf16 MXU operands: exact when table values lie on the bf16 grid.
    # (For f32-exact gathers at large vocab see the DMA-gather TODO above.)
    table_mxu = table.astype(jnp.bfloat16)

    kernel = functools.partial(
        _embedding_dropout_kernel,
        dropout_rate=float(dropout_rate),
        training=bool(training),
    )

    # VMEM footprint: single-buffered bf16 table + double-buffered out/id
    # tiles + in-kernel one-hot / f32 accumulator temporaries.
    footprint = (V * D * 2                      # bf16 table (Buffered(1))
                 + 2 * tpb * D * out_itemsize   # double-buffered out tile
                 + 2 * tpb * 4                  # double-buffered id tile
                 + tpb * V * 2                  # one-hot temp (bf16)
                 + tpb * D * 4)                 # f32 accumulator temp
    vmem_limit = int(min(max(footprint + (8 << 20), 32 << 20), 56 << 20))

    cost = pl.CostEstimate(
        flops=2 * n_pad * V * D,                    # one-hot MXU gather
        transcendentals=0,
        bytes_accessed=(n_pad * D * out_itemsize    # output writeback
                        + V * D * 2                 # bf16 table (fetched once)
                        + n_pad * 4),               # ids
    )

    out_flat = pl.pallas_call(
        kernel,
        out_shape=jax.ShapeDtypeStruct((n_pad, D), out_dtype),
        grid_spec=pltpu.PrefetchScalarGridSpec(
            num_scalar_prefetch=1,                  # seed -> SMEM
            grid=(n_pad // tpb,),
            in_specs=[
                # Per-step id block, token index on the sublane axis.
                pl.BlockSpec((tpb, 1), lambda i, seed: (i, 0)),
                # Full table resident in VMEM; constant block index and
                # single-buffered so it is DMA'd once and only once.
                pl.BlockSpec((V, D), lambda i, seed: (0, 0),
                             pipeline_mode=pl.Buffered(1)),
            ],
            out_specs=pl.BlockSpec((tpb, D), lambda i, seed: (i, 0)),
        ),
        compiler_params=pltpu.CompilerParams(
            # Disjoint output tiles, no carried accumulator -> parallel; a
            # v7x megacore can shard the >=2 grid steps across its two TCs
            # (each TC DMAs its own copy of the constant table block).
            dimension_semantics=("parallel",),
            vmem_limit_bytes=vmem_limit),
        cost_estimate=cost,
    )(seed_arr, ids2d, table_mxu)

    out = out_flat if n_pad == N else out_flat[:N]
    return out.reshape(B, S, D)


if __name__ == "__main__":
    key = jax.random.PRNGKey(0)
    k_table, k_words = jax.random.split(key)

    # Synthetic "w2v" table: vocab=64, vector_size=128 (D on the lane axis).
    V, D = 64, 128
    B, S = 2, 8
    dropout_rate = 0.1

    # Quantize table values to the bf16 grid so the bf16 one-hot MXU gather is
    # bit-exact against the pure-JAX reference.
    table = jax.random.normal(k_table, (V, D), dtype=jnp.float32)
    table = table.astype(jnp.bfloat16).astype(jnp.float32)
    words = jax.random.randint(k_words, (B, S), 0, V, dtype=jnp.int32)

    ref = table[words.reshape(-1)].reshape(B, S, D)

    # Eval-mode forward (dropout is identity, matching model.eval()).
    out = embeddings_forward(words, table, dropout_rate=dropout_rate,
                             training=False)
    out = jax.block_until_ready(out)
    assert out.shape == (B, S, D)
    assert jnp.allclose(out, ref, rtol=1e-5, atol=1e-5), \
        "Pallas embedding gather mismatch (eval mode)"

    # Training-mode forward: every element must be either dropped (0) or the
    # reference value scaled by 1/(1-p); and both cases must actually occur.
    out_tr = embeddings_forward(words, table, dropout_rate=dropout_rate,
                                training=True, seed=123)
    out_tr = jax.block_until_ready(out_tr)
    ref_scaled = ref / (1.0 - dropout_rate)
    kept = jnp.abs(out_tr - ref_scaled) <= 1e-4 + 1e-4 * jnp.abs(ref_scaled)
    dropped = jnp.abs(out_tr) <= 1e-6
    assert bool(jnp.all(kept | dropped)), "Pallas dropout output inconsistent"
    assert bool(jnp.any(kept)) and bool(jnp.any(dropped)), \
        "Pallas dropout mask degenerate"

    print("KERNEL_OK")
</pallas_src>

<mosaic_0001>
module attributes {stable_mosaic.version = 11 : i64} {
  func.func @_embedding_dropout_kernel(%arg0: i32, %arg1: memref<1xi32, #tpu.memory_space<smem>>, %arg2: memref<8x1xi32, #tpu.memory_space<vmem>>, %arg3: memref<64x128xbf16, #tpu.memory_space<vmem>>, %arg4: memref<8x128xf32, #tpu.memory_space<vmem>>) attributes {dimension_semantics = [#tpu.dimension_semantics<parallel>], iteration_bounds = array<i64: 2>, scalar_prefetch = 1 : i64, scratch_operands = 0 : i64, tpu.core_type = #tpu.core_type<tc>, window_params = [{transform_indices = @transform_0, window_bounds = array<i64: 8, 1>}, {pipeline_mode = #tpu.pipeline_mode<synchronous>, transform_indices = @transform_1, window_bounds = array<i64: 64, 128>}, {transform_indices = @transform_2, window_bounds = array<i64: 8, 128>}]} {
    %c0 = arith.constant 0 : index
    %c0_0 = arith.constant 0 : index
    %0 = vector.load %arg2[%c0, %c0_0] : memref<8x1xi32, #tpu.memory_space<vmem>>, vector<8x1xi32>
    %1 = tpu.iota {dimensions = array<i32: 1>} : vector<1x64xi32>
    %2 = vector.broadcast %1 : vector<1x64xi32> to vector<8x64xi32>
    %3 = vector.broadcast %0 : vector<8x1xi32> to vector<8x64xi32>
    %4 = arith.cmpi eq, %2, %3 : vector<8x64xi32>
    %5 = arith.extui %4 : vector<8x64xi1> to vector<8x64xi32>
    %6 = arith.sitofp %5 : vector<8x64xi32> to vector<8x64xf32>
    %7 = arith.truncf %6 : vector<8x64xf32> to vector<8x64xbf16>
    %c0_1 = arith.constant 0 : index
    %c0_2 = arith.constant 0 : index
    %8 = vector.load %arg3[%c0_1, %c0_2] : memref<64x128xbf16, #tpu.memory_space<vmem>>, vector<64x128xbf16>
    %cst = arith.constant dense<0.000000e+00> : vector<8x128xf32>
    %9 = tpu.matmul %7, %8, %cst {dimension_numbers = #tpu.dot_dimension_numbers<[1], [0], [0], [1], [0, 0, 1, 1], [], []>} : vector<8x64xbf16>, vector<64x128xbf16>, vector<8x128xf32> -> vector<8x128xf32>
    %c0_3 = arith.constant 0 : index
    %c0_4 = arith.constant 0 : index
    %10 = vector.load %arg4[%c0_3, %c0_4] : memref<8x128xf32, #tpu.memory_space<vmem>>, vector<8x128xf32>
    tpu.vector_store %arg4[%c0_3, %c0_4], %9 {strides = array<i32>} : memref<8x128xf32, #tpu.memory_space<vmem>>, vector<8x128xf32>,
    return
  }
  func.func @transform_0(%arg0: i32, %arg1: memref<1xi32, #tpu.memory_space<smem>>) -> (i32, i32) {
    %c0_i32 = arith.constant 0 : i32
    %c0_i32_0 = arith.constant 0 : i32
    return %arg0, %c0_i32 : i32, i32
  }
  func.func @transform_1(%arg0: i32, %arg1: memref<1xi32, #tpu.memory_space<smem>>) -> (i32, i32) {
    %c0_i32 = arith.constant 0 : i32
    %c0_i32_0 = arith.constant 0 : i32
    %c0_i32_1 = arith.constant 0 : i32
    return %c0_i32, %c0_i32_0 : i32, i32
  }
  func.func @transform_2(%arg0: i32, %arg1: memref<1xi32, #tpu.memory_space<smem>>) -> (i32, i32) {
    %c0_i32 = arith.constant 0 : i32
    %c0_i32_0 = arith.constant 0 : i32
    return %arg0, %c0_i32 : i32, i32
  }
}

</mosaic_0001>

<bundles_post_ra>
// kernel: tpu_custom_call.1
= control target key start
LH: loop header
LB: loop body
LE: loop exit
PB: predicated region body
PF: predicated region fallthrough
CT: control target
= control target key end

     0   :  { %9 = vsyncpa [#allocation5], 0  ;;  %s682_s0 = inlined_call_operand.<no memory space> [shape: s32[1], index: 0, kind: input, shape index: {}]   ;;  %s683_s1 = inlined_call_operand.vmem [shape: s32[16,1], index: 1, kind: input, shape index: {}]   ;;  %s684_s2 = inlined_call_operand.hbm [shape: bf16[64,128], index: 2, kind: input, shape index: {}]   ;;  %s685_s3 = inlined_call_operand.hbm [shape: f32[16,128], index: 3, kind: output, shape index: {}]  }
   0x1   :  { %10 = vsyncpa [#allocation6], 0 }
   0x2   :  { %12 = vsyncpa [#allocation6 + $0x1], 0  ;;  %s547_s12 = smov 0   ;;  %s549_s13 = smov 0  }
   0x3   :  { %s551_s14 = smov 0   ;;  %s553_s15 = smov 0  }
   0x4 LB: > { %s568_s0 = sadd.s32 4294967295, %s518_s15   ;;  %s329_s16 = sadd.s32 4294967294, %s518_s15   ;;  %s518_s15 = sphi %s553_s15, %s701_s15   ;;  %s514_s14 = sphi %s551_s14, %s700_s14   ;;  %s510_s13 = sphi %s549_s13, %s699_s13   ;;  %s506_s12 = sphi %s547_s12, %s698_s12  }
   0x5   : > { %s572_s17 = sadd.s32 1, %s518_s15   ;;  %s72_s18 = sadd.s32 1, %s514_s14 }
   0x6   : > { %s69_s19 = ssub.s32 %s518_s15, %s572_s17  ;;  %p82_p0 = scmp.ne.s32.totalorder %s514_s14, %s510_s13 }
   0x7   : > { %p70_p1 = scmp.eq.s32.totalorder %s69_s19, 0  ;;  %p83_p2 = scmp.eq.s32.totalorder %s568_s0, 1 }
   0x8   : > { %p88_p3 = scmp.ne.s32.totalorder %s510_s13, %s506_s12  ;;  %p89_p4 = scmp.eq.s32.totalorder %s329_s16, 1 }
   0x9   : > { %s583_s20 = scalar_select %p70_p1, %s514_s14, %s72_s18  }
   0xa   : > { %p585_p5 = por %p83_p2, %p82_p0  ;;  %p589_p6 = por %p89_p4, %p88_p3 }
   0xb   : > { %p330_p7 = scmp.ge.s32.totalorder %s518_s15, 1  ;;  %p96_p8 = scmp.lt.s32.totalorder %s518_s15, 3 }
   0xc   : > { %s689_s21 = scalar_select %p585_p5, 1, 0 }
   0xd   : > { %s690_s22 = scalar_select %p589_p6, 1, 0 }
   0xe   : > { %p686_p9 = scmp.eq.s32.totalorder %s568_s0, 0  ;;  %p596_p10 = pnand %p330_p7, %p96_p8 }
   0xf   : > { %s520_s24 = smov [#allocation4]   ;;  %s424_s29 = scalar_lea.hbm %s684_s2, 512 }
  0x10   : > { %s691_s23 = scalar_select %p596_p10, 1, 0 }
  0x11   : > { %s108_s25 = sshll.u32 %s520_s24, 4  ;;  %p370_p11 = pneg %p596_p10  ;;  %s109_s25 = int_to_ptr.vmem [resolvable:$true] %s108_s25 }
  0x12   : > { %p425_p13 = scmp.ne.s32.totalorder %s684_s2, %s424_s29  ;;  %p431_p3 = scmp.lt.u32.totalorder %s424_s29, %s684_s2 }
  0x13   : > { %p604_p12 = pnand %p686_p9, %p370_p11 }
  0x15   : > { %p426_p0 = pneg %p604_p12 }
  0x17   : > { %p427_p1 = pnand %p426_p0, %p425_p13 }
  0x19   : > { %p428_p2 = pneg %p427_p1 }
  0x1b   : > { %p433_p4 = pnand %p431_p3, %p428_p2 }
  0x1d   : > { %436 = shalt.err (!%p433_p4)
}
  0x1e   : > { %s437_s7 = scalar_lea.vmem %s109_s25, 512  ;;  %p445_p9 = scmp.lt.s32.totalorder %s109_s25, %s109_s25 }
  0x1f   : > { %p438_p7 = scmp.ne.s32.totalorder %s109_s25, %s437_s7  ;;  %p446_p6 = scmp.lt.s32.totalorder %s437_s7, %s437_s7 }
  0x21   : > { %p440_p8 = pnand %p438_p7, %p426_p0  ;;  %p447_p5 = por %p446_p6, %p445_p9 }
  0x23   : > { %p441_p11 = pneg %p440_p8 }
  0x25   : > { %p448_p10 = pnand %p447_p5, %p441_p11 }
  0x27   : > { %451 = shalt.err (!%p448_p10)
}
  0x28   : > { %s521_s8 = smov 64   ;;  %s522_s9 = smov 4  }
  0x29   : > { %373 = dma.hbm_to_vmem [thread:$0]  (!%p604_p12), %s684_s2, 512, %s109_s25, [#allocation5], %s521_s8, %s521_s8, %s522_s9  }
  0x2a   : > { %p693_p13 = scmp.ne.s32.totalorder %s691_s23, 0 }
  0x2b   : > { %p694_p1 = scmp.eq.s32.totalorder (!%p693_p13), %s568_s0, 0 }
  0x2c   : > { %131 = sbr.rel (%p693_p13) target bundleno = 418 (0x1a2), region = 28 }
  0x33   : > { %497 = dma.done.wait (%p694_p1), [#allocation5], 512   ;;  %p695_p0 = pmov %p694_p1 }
  0x34   : > { %p152_p5 = scmp.lt.s32.totalorder %s568_s0, 1  ;;  %v523_v0 = vmov 0   ;;  %v524_v1 = vmov 0.0   ;;  %v420_v3 = vld [vmem:[#allocation4] sm:$0xff]   ;;  %v421_v4 = vld [vmem:[#allocation4 + $0x8] sm:$0xff]   ;;  %vm525_vm0 = vmmov 0   ;;  %v158_v7 = vlaneseq }
  0x35   : > { %499 = vsyncadd (%p695_p0), [#allocation5], 4294966784  ;;  %419 = vset.pattern.permute.xlu0 %v523_v0  ;;  %352 = vmatprep.subr.bf16.mxu0 %v524_v1  ;;  %v422_v5 = vld [vmem:[#allocation4 + $0x10] sm:$0xff]   ;;  %v423_v6 = vld [vmem:[#allocation4 + $0x18] sm:$0xff]   ;;  %vm199_vm2 = vcmask 523264   ;;  %s149_s25 = sand.u32 1, %s510_s13  }
  0x36   : > { %s153_s16 = scalar_select %p152_p5, %s568_s0, 1  ;;  %353 = vmatpush3.bf16.msra.mxu0 %v420_v3  ;;  %360 = vmatprep.mubr.msk.bf16.mxu0 %vm525_vm0, %v524_v1  ;;  %v159_v8 = vand.u32 127, %v158_v7 }
  0x37   : > { %354 = vmatprep.subr.bf16.mxu0 %v524_v1  ;;  %s335_s26 = sshll.u32 %s149_s25, 3  ;;  %s344_s29 = sshll.u32 %s568_s0, 7 }
  0x38   : > { %s336_s18 = sshll.u32 %s153_s16, 3  ;;  %s151_s27 = scalar_lea.vmem [#allocation7], %s335_s26 }
  0x39   : > { %s155_s23 = scalar_lea.vmem %s683_s1, %s336_s18  ;;  %s258_s28 = sshll.u32 %s151_s27, 4  ;;  %s637_s28 = int_to_ptr.vmem [resolvable:$true] %s258_s28 }
  0x3a   : > { %v157_v2 = vld [vmem:[%s155_s23] sm:$0xff]  ;;  %355 = vmatpush3.bf16.msra.mxu0 %v421_v4  ;;  %s642_s5 = scalar_lea.hbm %s685_s3, %s344_s29  ;;  %s245_s6 = scalar_lea.sflag [#allocation6], %s149_s25 }
  0x3b   : > { %161 = vperm.xlu0 %419, %v157_v2   ;;  %356 = vmatprep.subr.bf16.mxu0 %v524_v1  ;;  %s452_s7 = scalar_lea.vmem %s637_s28, 128  ;;  %p696_p9 = scmp.ne.s32.totalorder %s689_s21, 0 }
  0x3c   : > { %p453_p6 = scmp.ne.s32.totalorder %s637_s28, %s452_s7  ;;  %s526_s0 = smov [#allocation7]  }
  0x3d   : > { %s456_s8 = sshll.u32 %s526_s0, 4  ;;  %s457_s8 = int_to_ptr.vmem [resolvable:$false] %s456_s8 }
  0x3e   : > { %357 = vmatpush3.bf16.msra.mxu0 %v422_v5  ;;  %p454_p10 = pnand %p453_p6, %p696_p9  ;;  %s458_s9 = scalar_lea.vmem %s457_s8, 256 }
  0x3f   : > { %358 = vmatprep.subr.bf16.mxu0 %v524_v1  ;;  %p459_p2 = scmp.lt.s32.totalorder %s637_s28, %s457_s8  ;;  %p460_p3 = scmp.lt.s32.totalorder %s458_s9, %s452_s7 }
  0x40   : > { %p455_p12 = pneg %p454_p10 }
  0x41   : > { %p461_p4 = por %p460_p3, %p459_p2 }
  0x42   : > { %359 = vmatpush3.bf16.msra.mxu0 %v423_v6 }
  0x43   : > { %p462_p7 = pnand %p461_p4, %p455_p12 }
  0xba   : > { %v162_v9 = vpop.permute.xlu0 %161 }
  0xbb   : > { %vm163_vm1 = vcmp.eq.s32.totalorder %v159_v8, %v162_v9 }
  0xbc   : > { %v337_v10 = vsel %vm163_vm1, 1.0, %v524_v1 }
  0xbd   : > { %v166_v11 = vpack.c.bf16 %v337_v10, %v337_v10 }
  0xbf   : > { %361 = vmatmul.mubr.msk.bf16.vlgmr.msra.gmra.mrb[0].mxu0 %vm199_vm2, %v166_v11 }
 0x192   : > { %v237_v12 = vpop.f32.mrb[0].mxu0 }
 0x193   : > { %243 = vst [vmem:[%s151_s27] sm:$0xff] %v237_v12  ;;  %v362_v13 = vpop.f32.mrb[1].mxu0 }
 0x194   : > { %v240_v14 = vpop.f32.mrb[2].mxu0 }
 0x195   : > { %465 = shalt.err (!%p462_p7)
}
 0x196   : > { %s466_s10 = scalar_lea.hbm %s642_s5, 128  ;;  %s470_s18 = scalar_lea.hbm %s685_s3, 256 }
 0x197   : > { %p467_p8 = scmp.ne.s32.totalorder %s642_s5, %s466_s10  ;;  %p471_p1 = scmp.lt.u32.totalorder %s642_s5, %s685_s3 }
 0x198   : > { %p472_p0 = scmp.lt.u32.totalorder %s470_s18, %s466_s10  ;;  %p474_p6 = scmp.lt.u32.totalorder %s466_s10, %s642_s5 }
 0x199   : > { %p468_p11 = pnand %p467_p8, %p696_p9 }
 0x19a   : > { %p473_p5 = por %p472_p0, %p471_p1 }
 0x19b   : > { %p469_p13 = pneg %p468_p11 }
 0x19c   : > { %p475_p10 = por %p474_p6, %p473_p5 }
 0x19e   : > { %p476_p12 = pnand %p475_p10, %p469_p13 }
 0x1a0   : > { %479 = shalt.err (!%p476_p12)
}
 0x1a1   : > { %368 = dma.vmem_to_hbm [thread:$0]  (%p696_p9), %s637_s28, 128, %s642_s5, %s245_s6   ;;  %v363_v15 = vpop.f32.mrb[3].mxu0 }
 0x1a2 PF: > { %p380_p2 = scmp.ge.s32.totalorder %s518_s15, 2  ;;  %s270_s23 = sand.u32 1, %s506_s12  }
 0x1a3   : > { %p697_p3 = scmp.ne.s32.totalorder %s690_s22, 0  ;;  %s271_s25 = scalar_lea.sflag [#allocation6], %s270_s23 }
 0x1a5   : > { %p375_p4 = pnand %p380_p2, %p697_p3 }
 0x1a7   : > { %501 = dma.done.wait (!%p375_p4), %s271_s25, 128  }
 0x1a8   : > { %503 = vsyncadd (!%p375_p4), %s271_s25, 4294967168  ;;  %p15_p7 = scmp.ge.s32.totalorder %s572_s17, 4   ;;  %s698_s12 = smov %s510_s13 }
 0x1a9   : > { %s699_s13 = smov %s514_s14  ;;  %s700_s14 = smov %s583_s20 }
 0x1aa   : > { %s701_s15 = smov %s572_s17  ;;  %17 = sbr.rel (!%p15_p7) target bundleno = 4 (0x4), region = 68 }
 0x1b1   :  { %276 = vsyncpa [#allocation5], 1 }
 0x1b2   :  { %278 = vsyncpa [#allocation5 + $0x1], 1 }
 0x1b3   :  { %279 = vsyncpa [#allocation6], 1 }
 0x1b4   :  { %281 = vsyncpa [#allocation6 + $0x1], 1 }

</bundles_post_ra>
